<compile_context>
chip_gen: v7x
topology: tpu7x:2x2x1
jax: 0.10.0
libtpu: 0.0.40
codegen_flags: <defaults>
</compile_context>

<pallas_src>
import functools

import jax
import jax.numpy as jnp
from jax.experimental import pallas as pl
from jax.experimental.pallas import tpu as pltpu


_LANE = 128
_SUBLANE = 8

_VMEM = pl.BlockSpec(memory_space=pltpu.MemorySpace.VMEM)
_SMEM = pl.BlockSpec(memory_space=pltpu.MemorySpace.SMEM)


def _round_up(n, m):
    return ((n + m - 1) // m) * m


def _apply_nonlinearity(u, nonlinearity):
    if nonlinearity == "tanh":
        return jnp.tanh(u)
    if nonlinearity == "relu":
        return jnp.maximum(u, 0.0)
    if nonlinearity in ("sigmoid", "logistic"):
        return jax.nn.sigmoid(u)
    return u  # identity / linear


# ----------------------------- Pallas kernels ------------------------------ #

def _fused_fwd_energy_kernel(*refs, num_layers, nonlinearity, use_bias):
    """Fused feed-forward init of (u_l, z_l) for all layers + total energy.

    refs = [x, W0,(b0), W1,(b1), ..., u0, z0, u1, z1, ..., e]
    The energy term reuses the in-register `pred` (== u at feed-forward
    initialization): no second matmul, no second DMA of W per layer.
    """
    x_ref = refs[0]
    idx = 1
    w_refs, b_refs = [], []
    for _ in range(num_layers):
        w_refs.append(refs[idx]); idx += 1
        if use_bias:
            b_refs.append(refs[idx]); idx += 1
    u_refs, z_refs = [], []
    for _ in range(num_layers):
        u_refs.append(refs[idx]); idx += 1
        z_refs.append(refs[idx]); idx += 1
    e_ref = refs[idx]

    h = x_ref[...]
    energy = jnp.float32(0.0)
    for l in range(num_layers):
        pred = jnp.dot(h, w_refs[l][...], preferred_element_type=jnp.float32)
        if use_bias:
            pred = pred + b_refs[l][...]
        u = pred                              # feed-forward init: u_l = pred_l
        u_refs[l][...] = u
        z = _apply_nonlinearity(u, nonlinearity)
        z_refs[l][...] = z
        err = u - pred                        # identically 0 here; fused energy path
        energy = energy + 0.5 * jnp.sum(err * err)
        h = z
    e_ref[0] = energy                         # scalar lives in SMEM


def _fused_energy_kernel(*refs, num_layers, use_bias, batch):
    """Total energy for externally supplied (u, z), one pallas_call total.

    E = sum_l 0.5 * || u_l - (z_{l-1} @ W_l + b_l) ||^2
    refs = [z_prev_0..z_prev_{L-1}, W0,(b0), ..., u_0..u_{L-1}, e]
    Padded batch rows are masked out (static `batch`).
    """
    idx = 0
    zp_refs = [refs[idx + l] for l in range(num_layers)]
    idx += num_layers
    w_refs, b_refs = [], []
    for _ in range(num_layers):
        w_refs.append(refs[idx]); idx += 1
        if use_bias:
            b_refs.append(refs[idx]); idx += 1
    u_refs = [refs[idx + l] for l in range(num_layers)]
    idx += num_layers
    e_ref = refs[idx]

    energy = jnp.float32(0.0)
    for l in range(num_layers):
        pred = jnp.dot(zp_refs[l][...], w_refs[l][...],
                       preferred_element_type=jnp.float32)
        if use_bias:
            pred = pred + b_refs[l][...]
        err = u_refs[l][...] - pred
        if err.shape[0] > batch:              # static check: mask padded rows
            row = jax.lax.broadcasted_iota(jnp.int32, err.shape, 0)
            err = jnp.where(row < batch, err, 0.0)
        energy = energy + 0.5 * jnp.sum(err * err)
    e_ref[0] = energy


# ------------------------------ Wrappers (jitted) --------------------------- #

def _forward_impl(x, weights_pad, biases_pad, *, dims, nonlinearity, use_bias):
    B = x.shape[0]
    Bp = _round_up(max(B, _SUBLANE), _SUBLANE)
    num_layers = len(weights_pad)
    d0p = weights_pad[0].shape[0]
    xp = jnp.zeros((Bp, d0p), jnp.float32).at[:B, :dims[0]].set(
        x.astype(jnp.float32))

    inputs = [xp]
    in_specs = [_VMEM]
    for l in range(num_layers):
        inputs.append(weights_pad[l]); in_specs.append(_VMEM)
        if use_bias:
            inputs.append(biases_pad[l]); in_specs.append(_VMEM)

    out_shapes, out_specs = [], []
    for l in range(num_layers):
        dp = weights_pad[l].shape[1]          # lane-dense (multiple of 128)
        out_shapes += [jax.ShapeDtypeStruct((Bp, dp), jnp.float32)] * 2
        out_specs += [_VMEM, _VMEM]
    out_shapes.append(jax.ShapeDtypeStruct((1,), jnp.float32))
    out_specs.append(_SMEM)

    kern = functools.partial(_fused_fwd_energy_kernel, num_layers=num_layers,
                             nonlinearity=nonlinearity, use_bias=use_bias)
    outs = pl.pallas_call(
        kern,
        out_shape=tuple(out_shapes),
        in_specs=in_specs,
        out_specs=tuple(out_specs),
    )(*inputs)

    u = [outs[2 * l][:B, :dims[l + 1]] for l in range(num_layers)]
    z = [x.astype(jnp.float32)] + [outs[2 * l + 1][:B, :dims[l + 1]]
                                   for l in range(num_layers)]
    total_energy = outs[-1][0]
    return u, z, total_energy


def _energy_impl(z_prev, u, weights_pad, biases_pad, *, dims, use_bias):
    num_layers = len(weights_pad)
    B = z_prev[0].shape[0]
    Bp = _round_up(max(B, _SUBLANE), _SUBLANE)

    inputs, in_specs = [], []
    for l in range(num_layers):
        dinp = weights_pad[l].shape[0]
        zp = jnp.zeros((Bp, dinp), jnp.float32).at[:B, :dims[l]].set(
            z_prev[l].astype(jnp.float32))
        inputs.append(zp); in_specs.append(_VMEM)
    for l in range(num_layers):
        inputs.append(weights_pad[l]); in_specs.append(_VMEM)
        if use_bias:
            inputs.append(biases_pad[l]); in_specs.append(_VMEM)
    for l in range(num_layers):
        doutp = weights_pad[l].shape[1]
        up = jnp.zeros((Bp, doutp), jnp.float32).at[:B, :dims[l + 1]].set(
            u[l].astype(jnp.float32))
        inputs.append(up); in_specs.append(_VMEM)

    kern = functools.partial(_fused_energy_kernel, num_layers=num_layers,
                             use_bias=use_bias, batch=B)
    e = pl.pallas_call(
        kern,
        out_shape=jax.ShapeDtypeStruct((1,), jnp.float32),
        in_specs=in_specs,
        out_specs=_SMEM,
    )(*inputs)
    return e[0]


# --------------------------- Model definition ------------------------------ #

class BaseModelPallas:
    """JAX/Pallas port of `baseModel` (stack of Linear layers + nonlinearity)."""

    def __init__(self, dims, nonlinearity="tanh", use_bias=True, key=None):
        self.dims = tuple(int(d) for d in dims)
        self.nonlinearity = nonlinearity
        self.use_bias = bool(use_bias)
        key = jax.random.PRNGKey(0) if key is None else key

        self.weights = []       # logical (in, out) == PyTorch W^T
        self.biases = []        # logical (1, out), filled with 0.0
        self.weights_pad = []   # lane-dense zero-padded copies for the kernels
        self.biases_pad = []
        for i in range(len(self.dims) - 1):
            key, sub = jax.random.split(key)
            din, dout = self.dims[i], self.dims[i + 1]
            bound = 1.0 / float(din) ** 0.5
            w = jax.random.uniform(sub, (din, dout), jnp.float32, -bound, bound)
            b = jnp.zeros((1, dout), jnp.float32)   # layer.bias.data.fill_(0.0)
            self.weights.append(w)
            self.biases.append(b)
            dinp, doutp = _round_up(din, _LANE), _round_up(dout, _LANE)
            wp = jnp.zeros((dinp, doutp), jnp.float32).at[:din, :dout].set(w)
            bp = jnp.zeros((1, doutp), jnp.float32).at[:, :dout].set(b)
            self.weights_pad.append(wp)
            self.biases_pad.append(bp)

        self._forward_jit = jax.jit(functools.partial(
            _forward_impl, dims=self.dims, nonlinearity=self.nonlinearity,
            use_bias=self.use_bias))
        self._energy_jit = jax.jit(functools.partial(
            _energy_impl, dims=self.dims, use_bias=self.use_bias))

    # -- activations_initializer equivalent (fused feed-forward pass) -------
    def initialize_u_z(self, x):
        u, z, _ = self._forward_jit(x, tuple(self.weights_pad),
                                    tuple(self.biases_pad))
        return u, z

    # -- total predictive-coding energy (single fused pallas_call) ----------
    def total_energy(self, u, z):
        return self._energy_jit(tuple(z[:-1]), tuple(u),
                                tuple(self.weights_pad),
                                tuple(self.biases_pad))

    # -- forward, mirroring baseModel.forward's return signature ------------
    def forward(self, x, u=None, z=None, mode="supervised"):
        if u is None or z is None:
            u, z, total_energy = self._forward_jit(
                x, tuple(self.weights_pad), tuple(self.biases_pad))
        else:
            total_energy = self.total_energy(u, z)
        return u, z, total_energy


# --------------------------------- Main ------------------------------------ #

if __name__ == "__main__":
    batch = 8
    dims = (32, 64, 16)

    model = BaseModelPallas(dims, nonlinearity="tanh", use_bias=True,
                            key=jax.random.PRNGKey(42))
    x = jax.random.normal(jax.random.PRNGKey(0), (batch, dims[0]), jnp.float32)

    u_new, z_new, total_energy = model.forward(x)
    jax.block_until_ready(total_energy)
    jax.block_until_ready(u_new[-1])
    jax.block_until_ready(z_new[-1])

    # sanity: shapes follow dims, energy of feed-forward init is ~0
    assert u_new[0].shape == (batch, dims[1])
    assert u_new[1].shape == (batch, dims[2])
    assert z_new[0].shape == (batch, dims[0])
    assert z_new[-1].shape == (batch, dims[2])
    assert float(total_energy) < 1e-4

    # numerics check against a plain-JAX reference of the feed-forward pass
    h = x
    for w, b in zip(model.weights, model.biases):
        h = jnp.tanh(jnp.dot(h, w, precision=jax.lax.Precision.HIGHEST) + b)
    assert jnp.allclose(z_new[-1], h, atol=1e-4), "feed-forward mismatch"

    # exercise the fused energy-only kernel on the returned activations
    e2 = model.total_energy(u_new, z_new)
    jax.block_until_ready(e2)
    assert float(e2) < 1e-4

    print("KERNEL_OK")
</pallas_src>

<mosaic_0001>
module attributes {stable_mosaic.version = 11 : i64} {
  func.func @_fused_fwd_energy_kernel(%arg0: memref<8x128xf32, #tpu.memory_space<vmem>>, %arg1: memref<128x128xf32, #tpu.memory_space<vmem>>, %arg2: memref<1x128xf32, #tpu.memory_space<vmem>>, %arg3: memref<128x128xf32, #tpu.memory_space<vmem>>, %arg4: memref<1x128xf32, #tpu.memory_space<vmem>>, %arg5: memref<8x128xf32, #tpu.memory_space<vmem>>, %arg6: memref<8x128xf32, #tpu.memory_space<vmem>>, %arg7: memref<8x128xf32, #tpu.memory_space<vmem>>, %arg8: memref<8x128xf32, #tpu.memory_space<vmem>>, %arg9: memref<1xf32, #tpu.memory_space<smem>>) attributes {dimension_semantics = [], scalar_prefetch = 0 : i64, scratch_operands = 0 : i64, tpu.core_type = #tpu.core_type<tc>} {
    %c0 = arith.constant 0 : index
    %c0_0 = arith.constant 0 : index
    %0 = vector.load %arg0[%c0, %c0_0] : memref<8x128xf32, #tpu.memory_space<vmem>>, vector<8x128xf32>
    %c0_1 = arith.constant 0 : index
    %c0_2 = arith.constant 0 : index
    %1 = vector.load %arg1[%c0_1, %c0_2] : memref<128x128xf32, #tpu.memory_space<vmem>>, vector<128x128xf32>
    %cst = arith.constant dense<0.000000e+00> : vector<8x128xf32>
    %2 = tpu.matmul %0, %1, %cst {dimension_numbers = #tpu.dot_dimension_numbers<[1], [0], [0], [1], [0, 0, 1, 1], [], []>} : vector<8x128xf32>, vector<128x128xf32>, vector<8x128xf32> -> vector<8x128xf32>
    %c0_3 = arith.constant 0 : index
    %c0_4 = arith.constant 0 : index
    %3 = vector.load %arg2[%c0_3, %c0_4] : memref<1x128xf32, #tpu.memory_space<vmem>>, vector<1x128xf32>
    %4 = vector.broadcast %3 : vector<1x128xf32> to vector<8x128xf32>
    %5 = arith.addf %2, %4 : vector<8x128xf32>
    %c0_5 = arith.constant 0 : index
    %c0_6 = arith.constant 0 : index
    %6 = vector.load %arg5[%c0_5, %c0_6] : memref<8x128xf32, #tpu.memory_space<vmem>>, vector<8x128xf32>
    tpu.vector_store %arg5[%c0_5, %c0_6], %5 {strides = array<i32>} : memref<8x128xf32, #tpu.memory_space<vmem>>, vector<8x128xf32>,
    %7 = math.tanh %5 : vector<8x128xf32>
    %c0_7 = arith.constant 0 : index
    %c0_8 = arith.constant 0 : index
    %8 = vector.load %arg6[%c0_7, %c0_8] : memref<8x128xf32, #tpu.memory_space<vmem>>, vector<8x128xf32>
    tpu.vector_store %arg6[%c0_7, %c0_8], %7 {strides = array<i32>} : memref<8x128xf32, #tpu.memory_space<vmem>>, vector<8x128xf32>,
    %9 = arith.subf %5, %5 : vector<8x128xf32>
    %10 = arith.mulf %9, %9 : vector<8x128xf32>
    %11 = vector.shape_cast %10 : vector<8x128xf32> to vector<1x8x128xf32>
    %cst_9 = arith.constant dense<0.000000e+00> : vector<1xf32>
    %12 = vector.multi_reduction <add>, %11, %cst_9 [1, 2] : vector<1x8x128xf32> to vector<1xf32>
    %13 = vector.shape_cast %12 : vector<1xf32> to vector<1x1x1xf32>
    %14 = vector.extract %13[0, 0, 0] : f32 from vector<1x1x1xf32>
    %cst_10 = arith.constant 5.000000e-01 : f32
    %15 = arith.mulf %cst_10, %14 : f32
    %cst_11 = arith.constant 0.000000e+00 : f32
    %16 = arith.addf %cst_11, %15 : f32
    %c0_12 = arith.constant 0 : index
    %c0_13 = arith.constant 0 : index
    %17 = vector.load %arg3[%c0_12, %c0_13] : memref<128x128xf32, #tpu.memory_space<vmem>>, vector<128x128xf32>
    %cst_14 = arith.constant dense<0.000000e+00> : vector<8x128xf32>
    %18 = tpu.matmul %7, %17, %cst_14 {dimension_numbers = #tpu.dot_dimension_numbers<[1], [0], [0], [1], [0, 0, 1, 1], [], []>} : vector<8x128xf32>, vector<128x128xf32>, vector<8x128xf32> -> vector<8x128xf32>
    %c0_15 = arith.constant 0 : index
    %c0_16 = arith.constant 0 : index
    %19 = vector.load %arg4[%c0_15, %c0_16] : memref<1x128xf32, #tpu.memory_space<vmem>>, vector<1x128xf32>
    %20 = vector.broadcast %19 : vector<1x128xf32> to vector<8x128xf32>
    %21 = arith.addf %18, %20 : vector<8x128xf32>
    %c0_17 = arith.constant 0 : index
    %c0_18 = arith.constant 0 : index
    %22 = vector.load %arg7[%c0_17, %c0_18] : memref<8x128xf32, #tpu.memory_space<vmem>>, vector<8x128xf32>
    tpu.vector_store %arg7[%c0_17, %c0_18], %21 {strides = array<i32>} : memref<8x128xf32, #tpu.memory_space<vmem>>, vector<8x128xf32>,
    %23 = math.tanh %21 : vector<8x128xf32>
    %c0_19 = arith.constant 0 : index
    %c0_20 = arith.constant 0 : index
    %24 = vector.load %arg8[%c0_19, %c0_20] : memref<8x128xf32, #tpu.memory_space<vmem>>, vector<8x128xf32>
    tpu.vector_store %arg8[%c0_19, %c0_20], %23 {strides = array<i32>} : memref<8x128xf32, #tpu.memory_space<vmem>>, vector<8x128xf32>,
    %25 = arith.subf %21, %21 : vector<8x128xf32>
    %26 = arith.mulf %25, %25 : vector<8x128xf32>
    %27 = vector.shape_cast %26 : vector<8x128xf32> to vector<1x8x128xf32>
    %cst_21 = arith.constant dense<0.000000e+00> : vector<1xf32>
    %28 = vector.multi_reduction <add>, %27, %cst_21 [1, 2] : vector<1x8x128xf32> to vector<1xf32>
    %29 = vector.shape_cast %28 : vector<1xf32> to vector<1x1x1xf32>
    %30 = vector.extract %29[0, 0, 0] : f32 from vector<1x1x1xf32>
    %cst_22 = arith.constant 5.000000e-01 : f32
    %31 = arith.mulf %cst_22, %30 : f32
    %32 = arith.addf %16, %31 : f32
    %c0_23 = arith.constant 0 : index
    %33 = memref.load %arg9[%c0_23] : memref<1xf32, #tpu.memory_space<smem>>
    memref.store %32, %arg9[%c0_23] : memref<1xf32, #tpu.memory_space<smem>>
    return
  }
}

</mosaic_0001>

<bundles_post_ra>
// kernel: _forward_impl.1
= control target key start
LH: loop header
LB: loop body
LE: loop exit
PB: predicated region body
PF: predicated region fallthrough
CT: control target
= control target key end

     0   :  { %15 = vsyncpa [#allocation3], 0  ;;  %s847_s0 = inlined_call_operand.vmem [shape: f32[8,128], index: 0, kind: input, shape index: {}]   ;;  %s848_s1 = inlined_call_operand.hbm [shape: f32[128,128], index: 1, kind: input, shape index: {}]   ;;  %s849_s2 = inlined_call_operand.vmem [shape: f32[1,128], index: 2, kind: input, shape index: {}]   ;;  %s850_s3 = inlined_call_operand.hbm [shape: f32[128,128], index: 3, kind: input, shape index: {}]   ;;  %s851_s4 = inlined_call_operand.vmem [shape: f32[1,128], index: 4, kind: input, shape index: {}]   ;;  %s852_s5 = inlined_call_operand.hbm [shape: f32[8,128], index: 5, kind: output, shape index: {0}]   ;;  %s853_s6 = inlined_call_operand.hbm [shape: f32[8,128], index: 6, kind: output, shape index: {1}]   ;;  %s854_s7 = inlined_call_operand.hbm [shape: f32[8,128], index: 7, kind: output, shape index: {2}]   ;;  %s855_s8 = inlined_call_operand.hbm [shape: f32[8,128], index: 8, kind: output, shape index: {3}]   ;;  %s856_s9 = inlined_call_operand.hbm [shape: f32[1], index: 9, kind: output, shape index: {4}]  }
   0x1   :  { %16 = vsyncpa [#allocation7], 0 }
   0x2   :  { %17 = vsyncpa [#allocation4], 0 }
   0x3   :  { %18 = vsyncpa [#allocation10], 0 }
   0x4   :  { %19 = vsyncpa [#allocation13], 0 }
   0x5   :  { %20 = vsyncpa [#allocation5], 0  ;;  %s676_s30 = smov [#allocation2]   ;;  %s522_s13 = scalar_lea.hbm %s848_s1, 2048 }
   0x6   :  { %s28_s10 = sshll.u32 %s676_s30, 4  ;;  %p523_p0 = scmp.ne.s32.totalorder %s848_s1, %s522_s13  ;;  %s29_s10 = int_to_ptr.vmem [resolvable:$true] %s28_s10 }
   0x7   :  { %p526_p1 = scmp.lt.u32.totalorder %s522_s13, %s848_s1 }
   0x9   :  { %p528_p2 = pnand %p526_p1, %p523_p0 }
   0xb   :  { %531 = shalt.err (!%p528_p2)
}
   0xc   :  { %s532_s18 = scalar_lea.vmem %s29_s10, 2048  ;;  %p537_p4 = scmp.lt.s32.totalorder %s29_s10, %s29_s10 }
   0xd   :  { %p533_p3 = scmp.ne.s32.totalorder %s29_s10, %s532_s18  ;;  %p538_p5 = scmp.lt.s32.totalorder %s532_s18, %s532_s18 }
   0xf   :  { %p539_p6 = por %p538_p5, %p537_p4 }
  0x11   :  { %p540_p7 = pnand %p539_p6, %p533_p3 }
  0x13   :  { %543 = shalt.err (!%p540_p7)
}
  0x14   :  { %s677_s19 = smov 128   ;;  %s678_s20 = smov 8  }
  0x15   :  { %34 = dma.hbm_to_vmem [thread:$0]  %s848_s1, 2048, %s29_s10, [#allocation3], %s677_s19, %s677_s19, %s678_s20  }
  0x16   :  { %s679_s23 = smov [#allocation6]   ;;  %s544_s27 = scalar_lea.hbm %s850_s3, 2048 }
  0x17   :  { %s42_s24 = sshll.u32 %s679_s23, 4  ;;  %p545_p8 = scmp.ne.s32.totalorder %s850_s3, %s544_s27  ;;  %s43_s24 = int_to_ptr.vmem [resolvable:$true] %s42_s24 }
  0x18   :  { %p548_p9 = scmp.lt.u32.totalorder %s544_s27, %s850_s3 }
  0x1a   :  { %p550_p10 = pnand %p548_p9, %p545_p8 }
  0x1c   :  { %553 = shalt.err (!%p550_p10)
}
  0x1d   :  { %s554_s12 = scalar_lea.vmem %s43_s24, 2048  ;;  %p559_p12 = scmp.lt.s32.totalorder %s43_s24, %s43_s24 }
  0x1e   :  { %p555_p11 = scmp.ne.s32.totalorder %s43_s24, %s554_s12  ;;  %p560_p13 = scmp.lt.s32.totalorder %s554_s12, %s554_s12 }
  0x20   :  { %p561_p0 = por %p560_p13, %p559_p12 }
  0x22   :  { %p562_p1 = pnand %p561_p0, %p555_p11 }
  0x24   :  { %565 = shalt.err (!%p562_p1)
}
  0x25   :  { %48 = dma.hbm_to_vmem [thread:$0]  %s850_s3, 2048, %s43_s24, [#allocation7], %s677_s19, %s677_s19, %s678_s20  }
  0x26   :  { %664 = dma.done.wait [#allocation3], 2048  }
  0x27   :  { %665 = vsyncadd [#allocation3], 4294965248 }
  0x28   :  { %666 = dma.done.wait [#allocation7], 2048  }
  0x29   :  { %667 = vsyncadd [#allocation7], 4294965248  ;;  %v680_v0 = vmov 0.0|0.0   ;;  %vm681_vm0 = vmmov 0   ;;  %v682_v1 = vmov 0.0   ;;  %v58_v2 = vld [vmem:[#allocation2] sm:$0xff] }
  0x2a   :  { %454 = vmatprep.subr.bf16.mxu0 %v680_v0  ;;  %416 = vmatprep.mubr.msk.f32.mxu0 %vm681_vm0, %v682_v1  ;;  %v59_v3 = vld [vmem:[#allocation2 + $0x8] sm:$0xff]  ;;  %v60_v4 = vld [vmem:[#allocation2 + $0x10] sm:$0xff]  ;;  %v61_v6 = vld [vmem:[#allocation2 + $0x18] sm:$0xff]  ;;  %s683_s16 = smov [#allocation9]   ;;  %s684_s18 = smov [#allocation8]  }
  0x2b   :  { %478 = vmatprep.subr.bf16.mxu1 %v680_v0  ;;  %451 = vmatprep.mubr.msk.f32.mxu1 %vm681_vm0, %v682_v1  ;;  %v455_v5 = vpack.c.bf16 %v59_v3, %v58_v2  ;;  %v458_v7 = vpack.c.bf16 %v61_v6, %v60_v4  ;;  %v62_v8 = vld [vmem:[#allocation2 + $0x20] sm:$0xff]  ;;  %v63_v9 = vld [vmem:[#allocation2 + $0x28] sm:$0xff]  ;;  %v169_v12 = vld [vmem:[#allocation6 + $0x10] sm:$0xff]  ;;  %s294_s17 = sshll.u32 %s683_s16, 4  ;;  %s284_s19 = sshll.u32 %s684_s18, 4  ;;  %s295_s17 = int_to_ptr.vmem [resolvable:$true] %s294_s17  ;;  %s285_s19 = int_to_ptr.vmem [resolvable:$true] %s284_s19 }
  0x2c   :  { %v167_v10 = vld [vmem:[#allocation6] sm:$0xff]  ;;  %v168_v11 = vld [vmem:[#allocation6 + $0x8] sm:$0xff]  ;;  %v170_v13 = vld [vmem:[#allocation6 + $0x18] sm:$0xff]  ;;  %v461_v14 = vpack.c.bf16 %v63_v9, %v62_v8  ;;  %s566_s20 = scalar_lea.vmem %s295_s17, 128  ;;  %p571_p3 = scmp.lt.s32.totalorder %s295_s17, %s295_s17 }
  0x2d   :  { %456 = vmatpush3.bf16.msra.mxu0 %v455_v5  ;;  %v479_v15 = vpack.c.bf16 %v168_v11, %v167_v10  ;;  %v64_v16 = vld [vmem:[#allocation2 + $0x30] sm:$0xff]  ;;  %v65_v17 = vld [vmem:[#allocation2 + $0x38] sm:$0xff]  ;;  %v482_v18 = vpack.c.bf16 %v170_v13, %v169_v12  ;;  %v171_v19 = vld [vmem:[#allocation6 + $0x20] sm:$0xff]  ;;  %p567_p2 = scmp.ne.s32.totalorder %s295_s17, %s566_s20  ;;  %p572_p4 = scmp.lt.s32.totalorder %s566_s20, %s566_s20 }
  0x2e   :  { %457 = vmatprep.subr.bf16.mxu0 %v680_v0  ;;  %v172_v20 = vld [vmem:[#allocation6 + $0x28] sm:$0xff]  ;;  %v464_v21 = vpack.c.bf16 %v65_v17, %v64_v16  ;;  %v66_v22 = vld [vmem:[#allocation2 + $0x40] sm:$0xff]  ;;  %v173_v25 = vld [vmem:[#allocation6 + $0x30] sm:$0xff] }
  0x2f   :  { %480 = vmatpush3.bf16.msra.mxu1 %v479_v15  ;;  %v67_v23 = vld [vmem:[#allocation2 + $0x48] sm:$0xff]  ;;  %v485_v24 = vpack.c.bf16 %v172_v20, %v171_v19  ;;  %v174_v26 = vld [vmem:[#allocation6 + $0x38] sm:$0xff]  ;;  %v68_v28 = vld [vmem:[#allocation2 + $0x50] sm:$0xff]  ;;  %p573_p5 = por %p572_p4, %p571_p3 }
  0x30   :  { %481 = vmatprep.subr.bf16.mxu1 %v680_v0  ;;  %v467_v27 = vpack.c.bf16 %v67_v23, %v66_v22  ;;  %v69_v29 = vld [vmem:[#allocation2 + $0x58] sm:$0xff]  ;;  %v488_v30 = vpack.c.bf16 %v174_v26, %v173_v25  ;;  %v175_v31 = vld [vmem:[#allocation6 + $0x40] sm:$0xff]  ;;  %v176_v32 = vld [vmem:[#allocation6 + $0x48] sm:$0xff] }
  0x31   :  { %459 = vmatpush3.bf16.msra.mxu0 %v458_v7  ;;  %v470_v33 = vpack.c.bf16 %v69_v29, %v68_v28  ;;  %v70_v34 = vld [vmem:[#allocation2 + $0x60] sm:$0xff]  ;;  %v71_v35 = vld [vmem:[#allocation2 + $0x68] sm:$0xff]  ;;  %v491_v36 = vpack.c.bf16 %v176_v32, %v175_v31  ;;  %v72_v38 = vld [vmem:[#allocation2 + $0x70] sm:$0xff]  ;;  %p574_p6 = pnand %p573_p5, %p567_p2 }
  0x32   :  { %460 = vmatprep.subr.bf16.mxu0 %v680_v0  ;;  %v473_v37 = vpack.c.bf16 %v71_v35, %v70_v34  ;;  %v73_v39 = vld [vmem:[#allocation2 + $0x78] sm:$0xff]  ;;  %v57_v41 = vld [vmem:[%s847_s0] sm:$0xff]  ;;  %v177_v42 = vld [vmem:[#allocation6 + $0x50] sm:$0xff] }
  0x33   :  { %483 = vmatpush3.bf16.msra.mxu1 %v482_v18  ;;  %v476_v40 = vpack.c.bf16 %v73_v39, %v72_v38  ;;  %v178_v43 = vld [vmem:[#allocation6 + $0x58] sm:$0xff]  ;;  %v179_v45 = vld [vmem:[#allocation6 + $0x60] sm:$0xff]  ;;  %v180_v46 = vld [vmem:[#allocation6 + $0x68] sm:$0xff] }
  0x34   :  { %484 = vmatprep.subr.bf16.mxu1 %v680_v0  ;;  %v494_v44 = vpack.c.bf16 %v178_v43, %v177_v42  ;;  %v497_v47 = vpack.c.bf16 %v180_v46, %v179_v45  ;;  %v181_v48 = vld [vmem:[#allocation6 + $0x70] sm:$0xff]  ;;  %v182_v49 = vld [vmem:[#allocation6 + $0x78] sm:$0xff]  ;;  %v348_v51 = vld [vmem:[%s849_s2] ss:$0 sm:$0xff] }
  0x35   :  { %462 = vmatpush3.bf16.msra.mxu0 %v461_v14  ;;  %v500_v50 = vpack.c.bf16 %v182_v49, %v181_v48  ;;  %v349_v1 = vld [vmem:[%s851_s4] ss:$0 sm:$0xff] }
  0x36   :  { %463 = vmatprep.subr.bf16.mxu0 %v680_v0 }
  0x37   :  { %486 = vmatpush3.bf16.msra.mxu1 %v485_v24 }
  0x38   :  { %487 = vmatprep.subr.bf16.mxu1 %v680_v0 }
  0x39   :  { %465 = vmatpush3.bf16.msra.mxu0 %v464_v21 }
  0x3a   :  { %466 = vmatprep.subr.bf16.mxu0 %v680_v0 }
  0x3b   :  { %489 = vmatpush3.bf16.msra.mxu1 %v488_v30 }
  0x3c   :  { %490 = vmatprep.subr.bf16.mxu1 %v680_v0 }
  0x3d   :  { %468 = vmatpush3.bf16.msra.mxu0 %v467_v27 }
  0x3e   :  { %469 = vmatprep.subr.bf16.mxu0 %v680_v0 }
  0x3f   :  { %492 = vmatpush3.bf16.msra.mxu1 %v491_v36 }
  0x40   :  { %493 = vmatprep.subr.bf16.mxu1 %v680_v0 }
  0x41   :  { %471 = vmatpush3.bf16.msra.mxu0 %v470_v33 }
  0x42   :  { %472 = vmatprep.subr.bf16.mxu0 %v680_v0 }
  0x43   :  { %495 = vmatpush3.bf16.msra.mxu1 %v494_v44 }
  0x44   :  { %496 = vmatprep.subr.bf16.mxu1 %v680_v0 }
  0x45   :  { %474 = vmatpush3.bf16.msra.mxu0 %v473_v37 }
  0x46   :  { %475 = vmatprep.subr.bf16.mxu0 %v680_v0 }
  0x47   :  { %498 = vmatpush3.bf16.msra.mxu1 %v497_v47 }
  0x48   :  { %499 = vmatprep.subr.bf16.mxu1 %v680_v0 }
  0x49   :  { %477 = vmatpush3.bf16.msra.mxu0 %v476_v40 }
  0x4b   :  { %501 = vmatpush3.bf16.msra.mxu1 %v500_v50 }
  0x4c   :  { %417 = vmatmul.mubr.f32.vlgmr.msra.gmra.mrb[0].mxu0 %v57_v41 }
 0x11f   :  { %v147_v52 = vpop.f32.mrb[0].mxu0 }
 0x120   :  { %v148_v53 = vadd.f32 %v348_v51, %v147_v52  ;;  %v418_v54 = vpop.f32.mrb[1].mxu0 }
 0x122   :  { %518 = vtanh.f32 %v148_v53  ;;  %151 = vst [vmem:[#allocation8] sm:$0xff] %v148_v53  ;;  %v154_v55 = vsub.f32 %v148_v53, %v148_v53 }
 0x124   :  { %v155_v56 = vmul.f32 %v154_v55, %v154_v55 }
 0x126   :  { %156 = vadd.xlane.f32.xlu0 %v155_v56 }
 0x12c   :  { %v519_v57 = vpop.eup %518 }
 0x12d   :  { %153 = vst [vmem:[#allocation9] sm:$0xff] %v519_v57  ;;  %452 = vmatmul.mubr.f32.vlgmr.msra.gmra.mrb[0].mxu1 %v519_v57 }
 0x1b3   :  { %v157_v58 = vpop.xlane.xlu0 %156 }
 0x1b4   :  { %v158_v59 = vrot.slane %v157_v58, 4 }
 0x1b6   :  { %v159_v60 = vadd.f32 %v158_v59, %v157_v58 }
 0x1b8   :  { %v160_v61 = vrot.slane %v159_v60, 2 }
 0x1ba   :  { %v161_v62 = vadd.f32 %v160_v61, %v159_v60 }
 0x1bc   :  { %v162_v63 = vrot.slane %v161_v62, 1 }
 0x1be   :  { %v163_v0 = vadd.f32 %v162_v63, %v161_v62 }
 0x1c0   :  { %502 = vpush %v163_v0 }
 0x200   :  { %v256_v2 = vpop.f32.mrb[0].mxu1 }
 0x201   :  { %v257_v3 = vadd.f32 %v349_v1, %v256_v2  ;;  %v453_v4 = vpop.f32.mrb[1].mxu1 }
 0x203   :  { %520 = vtanh.f32 %v257_v3  ;;  %260 = vst [vmem:[#allocation11] sm:$0xff] %v257_v3  ;;  %v263_v5 = vsub.f32 %v257_v3, %v257_v3 }
 0x205   :  { %v264_v6 = vmul.f32 %v263_v5, %v263_v5 }
 0x207   :  { %265 = vadd.xlane.f32.xlu0 %v264_v6 }
 0x20d   :  { %v521_v7 = vpop.eup %520 }
 0x20e   :  { %262 = vst [vmem:[#allocation12] sm:$0xff] %v521_v7 }
 0x20f   :  { %577 = shalt.err (!%p574_p6)
}
 0x210   :  { %s578_s22 = scalar_lea.hbm %s853_s6, 128 }
 0x211   :  { %p579_p7 = scmp.ne.s32.totalorder %s853_s6, %s578_s22  ;;  %p582_p8 = scmp.lt.u32.totalorder %s578_s22, %s853_s6 }
 0x213   :  { %p584_p9 = pnand %p582_p8, %p579_p7 }
 0x215   :  { %587 = shalt.err (!%p584_p9)
}
 0x216   :  { %297 = dma.vmem_to_hbm [thread:$0]  %s295_s17, 128, %s853_s6, [#allocation10]  }
 0x217   :  { %s588_s29 = scalar_lea.vmem %s285_s19, 128  ;;  %p593_p11 = scmp.lt.s32.totalorder %s285_s19, %s285_s19 }
 0x218   :  { %p589_p10 = scmp.ne.s32.totalorder %s285_s19, %s588_s29  ;;  %p594_p12 = scmp.lt.s32.totalorder %s588_s29, %s588_s29 }
 0x21a   :  { %p595_p13 = por %p594_p12, %p593_p11 }
 0x21c   :  { %p596_p0 = pnand %p595_p13, %p589_p10 }
 0x21e   :  { %599 = shalt.err (!%p596_p0)
}
 0x21f   :  { %s600_s12 = scalar_lea.hbm %s852_s5, 128 }
 0x220   :  { %p601_p1 = scmp.ne.s32.totalorder %s852_s5, %s600_s12  ;;  %p604_p2 = scmp.lt.u32.totalorder %s600_s12, %s852_s5 }
 0x222   :  { %p606_p3 = pnand %p604_p2, %p601_p1 }
 0x224   :  { %609 = shalt.err (!%p606_p3)
}
 0x225   :  { %287 = dma.vmem_to_hbm [thread:$0]  %s285_s19, 128, %s852_s5, [#allocation4]  }
 0x226   :  { %s685_s15 = smov [#allocation11]   ;;  %s686_s2 = smov [#allocation12]  }
 0x227   :  { %s304_s0 = sshll.u32 %s685_s15, 4  ;;  %s314_s16 = sshll.u32 %s686_s2, 4  ;;  %s305_s0 = int_to_ptr.vmem [resolvable:$true] %s304_s0  ;;  %s315_s16 = int_to_ptr.vmem [resolvable:$true] %s314_s16 }
 0x228   :  { %s610_s17 = scalar_lea.vmem %s305_s0, 128  ;;  %p615_p5 = scmp.lt.s32.totalorder %s305_s0, %s305_s0 }
 0x229   :  { %p611_p4 = scmp.ne.s32.totalorder %s305_s0, %s610_s17  ;;  %p616_p6 = scmp.lt.s32.totalorder %s610_s17, %s610_s17 }
 0x22b   :  { %p617_p7 = por %p616_p6, %p615_p5 }
 0x22d   :  { %p618_p8 = pnand %p617_p7, %p611_p4 }
 0x22f   :  { %621 = shalt.err (!%p618_p8)
}
 0x230   :  { %s622_s4 = scalar_lea.hbm %s854_s7, 128 }
 0x231   :  { %p623_p9 = scmp.ne.s32.totalorder %s854_s7, %s622_s4  ;;  %p626_p10 = scmp.lt.u32.totalorder %s622_s4, %s854_s7 }
 0x233   :  { %p628_p11 = pnand %p626_p10, %p623_p9 }
 0x235   :  { %631 = shalt.err (!%p628_p11)
}
 0x236   :  { %307 = dma.vmem_to_hbm [thread:$0]  %s305_s0, 128, %s854_s7, [#allocation10]  }
 0x237   :  { %s632_s25 = scalar_lea.vmem %s315_s16, 128  ;;  %p637_p13 = scmp.lt.s32.totalorder %s315_s16, %s315_s16 }
 0x238   :  { %p633_p12 = scmp.ne.s32.totalorder %s315_s16, %s632_s25  ;;  %p638_p0 = scmp.lt.s32.totalorder %s632_s25, %s632_s25 }
 0x23a   :  { %p639_p1 = por %p638_p0, %p637_p13 }
 0x23c   :  { %p640_p2 = pnand %p639_p1, %p633_p12 }
 0x23e   :  { %643 = shalt.err (!%p640_p2)
}
 0x23f   :  { %s644_s28 = scalar_lea.hbm %s855_s8, 128 }
 0x240   :  { %p645_p3 = scmp.ne.s32.totalorder %s855_s8, %s644_s28  ;;  %p648_p4 = scmp.lt.u32.totalorder %s644_s28, %s855_s8 }
 0x242   :  { %p650_p5 = pnand %p648_p4, %p645_p3 }
 0x244   :  { %653 = shalt.err (!%p650_p5)
}
 0x245   :  { %317 = dma.vmem_to_hbm [thread:$0]  %s315_s16, 128, %s855_s8, [#allocation13]  }
 0x246   :  { %s503_s10 = spop %502  ;;  %s654_s2 = scalar_lea.hbm %s856_s9, 16 }
 0x247   :  { %s165_s3 = smul.f32 0.5, %s503_s10  ;;  %p655_p6 = scmp.ne.s32.totalorder %s856_s9, %s654_s2 }
 0x248   :  { %p658_p7 = scmp.lt.u32.totalorder %s654_s2, %s856_s9 }
 0x24a   :  { %p660_p8 = pnand %p658_p7, %p655_p6 }
 0x294   :  { %v266_v8 = vpop.xlane.xlu0 %265 }
 0x295   :  { %v267_v9 = vrot.slane %v266_v8, 4 }
 0x297   :  { %v268_v10 = vadd.f32 %v267_v9, %v266_v8 }
 0x299   :  { %v269_v11 = vrot.slane %v268_v10, 2 }
 0x29b   :  { %v270_v12 = vadd.f32 %v269_v11, %v268_v10 }
 0x29d   :  { %v271_v13 = vrot.slane %v270_v12, 1 }
 0x29f   :  { %v272_v14 = vadd.f32 %v271_v13, %v270_v12 }
 0x2a1   :  { %504 = vpush %v272_v14 }
 0x2d2   :  { %s505_s13 = spop %504 }
 0x2d3   :  { %s274_s6 = smul.f32 0.5, %s505_s13 }
 0x2d5   :  { %s275_s14 = sadd.f32 %s274_s6, %s165_s3 }
 0x2d7   :  { %277 = sst [smem:[#allocation14]] %s275_s14 }
 0x2d8   :  { %663 = shalt.err (!%p660_p8)
}
 0x2d9   :  { %s687_s20 = smov [#allocation14]  }
 0x2da   :  { %325 = dma.smem_to_hbm %s687_s20, 16, %s856_s9, [#allocation5]  }
 0x2db   :  { %668 = dma.done.wait [#allocation4], 128  }
 0x2dc   :  { %669 = vsyncadd [#allocation4], 4294967168 }
 0x2dd   :  { %670 = dma.done.wait [#allocation10], 256  }
 0x2de   :  { %671 = vsyncadd [#allocation10], 4294967040 }
 0x2df   :  { %672 = dma.done.wait [#allocation13], 128  }
 0x2e0   :  { %673 = vsyncadd [#allocation13], 4294967168 }
 0x2e1   :  { %674 = dma.done.wait [#allocation5], 16  }
 0x2e2   :  { %675 = vsyncadd [#allocation5], 4294967280 }
 0x2e3   :  { %341 = sfence }
 0x2e4   :  { %342 = vsyncpa [#allocation3], 1 }
 0x2e5   :  { %343 = vsyncpa [#allocation7], 1 }
 0x2e6   :  { %344 = vsyncpa [#allocation4], 1 }
 0x2e7   :  { %345 = vsyncpa [#allocation10], 1 }
 0x2e8   :  { %346 = vsyncpa [#allocation13], 1 }
 0x2e9   :  { %347 = vsyncpa [#allocation5], 1 }

</bundles_post_ra>
